<compile_context>
chip_gen: v7x
topology: tpu7x:2x2x1
jax: 0.10.0
libtpu: 0.0.40
codegen_flags: <defaults>
</compile_context>

<pallas_src>
import functools

import jax
import jax.numpy as jnp
from jax.experimental import pallas as pl
from jax.experimental.pallas import tpu as pltpu


def _depth_to_space_kernel(x_ref, o_ref, *, block_size, out_depth):
    # x_ref: (1, tH, W, C) NHWC tile, C = bs*bs*D.
    # o_ref: (1, tH, bs, W, bs*D) tile;
    #   o[0, h, k, w, j*D + d] = x[0, h, w, (k*bs + j)*D + d]
    # The 5-D output reshapes contiguously (outside) to NHWC (H*bs, W*bs, D).
    bs = block_size
    bsD = bs * out_depth
    for k in range(bs):  # static, tiny trip count: one wide copy per k
        # (tH, W, bs*D) -> (tH, W, bs*D): identical minor-dim layout, so this
        # lowers to unmasked wide stores (no relayout, no masking).
        o_ref[0, :, k, :, :] = x_ref[0, :, :, k * bsD:(k + 1) * bsD]


def _pick_tile_h(H, W, C, itemsize, target_block_bytes=6 * 1024 * 1024):
    # Largest divisor of H whose (tH, W, C) block stays under ~6 MiB.  With
    # double-buffered input + output blocks that is ~24 MiB of VMEM per step:
    # inside the 32 MiB scoped default and far inside v7x's 64 MiB physical.
    row_bytes = W * C * itemsize
    tile = 1
    for cand in range(1, H + 1):
        if H % cand == 0 and cand * row_bytes <= target_block_bytes:
            tile = cand
    return tile


def depth_to_space(x_nchw, block_size):
    B, C, H, W = x_nchw.shape
    bs = block_size
    assert C % (bs * bs) == 0, "channels must be divisible by block_size^2"
    D = C // (bs * bs)
    bsD = bs * D

    # Glue: NCHW -> NHWC (XLA pass; see TODO above).
    x_nhwc = jnp.transpose(x_nchw, (0, 2, 3, 1))

    tH = _pick_tile_h(H, W, C, x_nhwc.dtype.itemsize)
    grid = (B, H // tH)

    kernel = functools.partial(_depth_to_space_kernel, block_size=bs, out_depth=D)
    out5 = pl.pallas_call(
        kernel,
        out_shape=jax.ShapeDtypeStruct((B, H, bs, W, bsD), x_nhwc.dtype),
        grid=grid,
        in_specs=[
            pl.BlockSpec((1, tH, W, C), lambda b, ht: (b, ht, 0, 0)),
        ],
        out_specs=pl.BlockSpec(
            (1, tH, bs, W, bsD), lambda b, ht: (b, ht, 0, 0, 0)
        ),
        compiler_params=pltpu.CompilerParams(
            dimension_semantics=("parallel", "parallel"),
            vmem_limit_bytes=48 * 1024 * 1024,
        ),
    )(x_nhwc)

    # Glue: contiguous (free) view to NHWC, then NHWC -> NCHW.
    out_nhwc = out5.reshape(B, H * bs, W * bs, D)
    return jnp.transpose(out_nhwc, (0, 3, 1, 2))


def _reference(x_nchw, block_size):
    # Pure-JAX reference reproducing the PyTorch forward exactly (DCR order,
    # as in the NR-GAN DepthToSpace module — NOT torch.pixel_shuffle's CRD).
    B, C, H, W = x_nchw.shape
    bs = block_size
    D = C // (bs * bs)
    x6 = x_nchw.reshape(B, bs, bs, D, H, W)           # (b, k, j, d, h, w)
    out = jnp.transpose(x6, (0, 3, 4, 1, 5, 2))       # (b, d, h, k, w, j)
    return out.reshape(B, D, H * bs, W * bs)


if __name__ == "__main__":
    key = jax.random.PRNGKey(0)
    block_size = 2
    # Small but layout-realistic: D = 64 -> bs*D = 128 (lane-dense stores),
    # W = 8 (sublane-aligned).  Output is (2, 64, 16, 16).
    B, C, H, W = 2, 256, 8, 8
    x = jax.random.normal(key, (B, C, H, W), dtype=jnp.float32)

    out = depth_to_space(x, block_size)
    out = jax.block_until_ready(out)

    ref = _reference(x, block_size)
    assert out.shape == (B, C // (block_size ** 2), H * block_size, W * block_size)
    assert out.dtype == x.dtype
    assert jnp.allclose(out, ref), "Pallas DepthToSpace mismatch vs reference"
    print("KERNEL_OK")
</pallas_src>

<mosaic_0001>
module attributes {stable_mosaic.version = 11 : i64} {
  func.func @_depth_to_space_kernel(%arg0: i32, %arg1: i32, %arg2: memref<1x8x8x256xf32, #tpu.memory_space<vmem>>, %arg3: memref<1x8x2x8x128xf32, #tpu.memory_space<vmem>>) attributes {dimension_semantics = [#tpu.dimension_semantics<parallel>, #tpu.dimension_semantics<parallel>], iteration_bounds = array<i64: 2, 1>, scalar_prefetch = 0 : i64, scratch_operands = 0 : i64, tpu.core_type = #tpu.core_type<tc>, window_params = [{transform_indices = @transform_0, window_bounds = array<i64: 1, 8, 8, 256>}, {transform_indices = @transform_1, window_bounds = array<i64: 1, 8, 2, 8, 128>}]} {
    %c0 = arith.constant 0 : index
    %c0_0 = arith.constant 0 : index
    %c0_1 = arith.constant 0 : index
    %c0_2 = arith.constant 0 : index
    %0 = vector.load %arg2[%c0, %c0_0, %c0_1, %c0_2] : memref<1x8x8x256xf32, #tpu.memory_space<vmem>>, vector<1x8x8x128xf32>
    %1 = vector.shape_cast %0 : vector<1x8x8x128xf32> to vector<8x8x128xf32>
    %c0_3 = arith.constant 0 : index
    %c0_4 = arith.constant 0 : index
    %c0_5 = arith.constant 0 : index
    %c0_6 = arith.constant 0 : index
    %c0_7 = arith.constant 0 : index
    %2 = vector.load %arg3[%c0_3, %c0_4, %c0_5, %c0_6, %c0_7] : memref<1x8x2x8x128xf32, #tpu.memory_space<vmem>>, vector<1x8x1x8x128xf32>
    %3 = vector.shape_cast %2 : vector<1x8x1x8x128xf32> to vector<8x8x128xf32>
    %4 = vector.shape_cast %1 : vector<8x8x128xf32> to vector<1x8x1x8x128xf32>
    tpu.vector_store %arg3[%c0_3, %c0_4, %c0_5, %c0_6, %c0_7], %4 {strides = array<i32>} : memref<1x8x2x8x128xf32, #tpu.memory_space<vmem>>, vector<1x8x1x8x128xf32>,
    %c0_8 = arith.constant 0 : index
    %c0_9 = arith.constant 0 : index
    %c0_10 = arith.constant 0 : index
    %c128 = arith.constant 128 : index
    %5 = vector.load %arg2[%c0_8, %c0_9, %c0_10, %c128] : memref<1x8x8x256xf32, #tpu.memory_space<vmem>>, vector<1x8x8x128xf32>
    %6 = vector.shape_cast %5 : vector<1x8x8x128xf32> to vector<8x8x128xf32>
    %c0_11 = arith.constant 0 : index
    %c0_12 = arith.constant 0 : index
    %c1 = arith.constant 1 : index
    %c0_13 = arith.constant 0 : index
    %c0_14 = arith.constant 0 : index
    %7 = vector.load %arg3[%c0_11, %c0_12, %c1, %c0_13, %c0_14] : memref<1x8x2x8x128xf32, #tpu.memory_space<vmem>>, vector<1x8x1x8x128xf32>
    %8 = vector.shape_cast %7 : vector<1x8x1x8x128xf32> to vector<8x8x128xf32>
    %9 = vector.shape_cast %6 : vector<8x8x128xf32> to vector<1x8x1x8x128xf32>
    tpu.vector_store %arg3[%c0_11, %c0_12, %c1, %c0_13, %c0_14], %9 {strides = array<i32>} : memref<1x8x2x8x128xf32, #tpu.memory_space<vmem>>, vector<1x8x1x8x128xf32>,
    return
  }
  func.func @transform_0(%arg0: i32, %arg1: i32) -> (i32, i32, i32, i32) {
    %c0_i32 = arith.constant 0 : i32
    %c0_i32_0 = arith.constant 0 : i32
    %c0_i32_1 = arith.constant 0 : i32
    return %arg0, %arg1, %c0_i32, %c0_i32_0 : i32, i32, i32, i32
  }
  func.func @transform_1(%arg0: i32, %arg1: i32) -> (i32, i32, i32, i32, i32) {
    %c0_i32 = arith.constant 0 : i32
    %c0_i32_0 = arith.constant 0 : i32
    %c0_i32_1 = arith.constant 0 : i32
    %c0_i32_2 = arith.constant 0 : i32
    return %arg0, %arg1, %c0_i32, %c0_i32_0, %c0_i32_1 : i32, i32, i32, i32, i32
  }
}

</mosaic_0001>

<bundles_post_ra>
// kernel: tpu_custom_call.1
= control target key start
LH: loop header
LB: loop body
LE: loop exit
PB: predicated region body
PF: predicated region fallthrough
CT: control target
= control target key end

     0   :  { %6 = vsyncpa [#allocation3], 0  ;;  %s726_s0 = inlined_call_operand.hbm [shape: f32[2,8,8,256], index: 0, kind: input, shape index: {}]   ;;  %s727_s1 = inlined_call_operand.hbm [shape: f32[2,8,2,8,128], index: 1, kind: output, shape index: {}]  }
   0x1   :  { %8 = vsyncpa [#allocation3 + $0x1], 0 }
   0x2   :  { %9 = vsyncpa [#allocation4], 0 }
   0x3   :  { %11 = vsyncpa [#allocation4 + $0x1], 0  ;;  %s514_s6 = smov 0   ;;  %s516_s7 = smov 0  }
   0x4   :  { %s518_s8 = smov 0   ;;  %s520_s9 = smov 0  }
   0x5   :  { %s522_s10 = smov 0   ;;  %s524_s11 = smov 0  }
   0x6 LB: > { %s293_s12 = sadd.s32 4294967295, %s496_s11   ;;  %s294_s13 = sadd.s32 4294967294, %s496_s11   ;;  %s496_s11 = sphi %s524_s11, %s17_s11   ;;  %s492_s10 = sphi %s522_s10, %s742_s10   ;;  %s488_s9 = sphi %s520_s9, %s741_s9   ;;  %s484_s8 = sphi %s518_s8, %s740_s8   ;;  %s480_s7 = sphi %s516_s7, %s739_s7   ;;  %s476_s6 = sphi %s514_s6, %s738_s6  }
   0x7   : > { %s29_s14 = sadd.s32 1, %s492_s10  ;;  %s38_s15 = sadd.s32 1, %s484_s8 }
   0x8   : > { %p31_p0 = scmp.ge.s32.totalorder %s29_s14, 2  ;;  %p45_p1 = scmp.ne.s32.totalorder %s484_s8, %s480_s7 }
   0x9   : > { %p46_p2 = scmp.eq.s32.totalorder %s496_s11, 0  ;;  %p51_p3 = scmp.ne.s32.totalorder %s480_s7, %s476_s6 }
   0xa   : > { %s744_s14 = smov (%p31_p0, %s29_s14), 0  ;;  %p52_p5 = scmp.eq.s32.totalorder %s293_s12, 0 }
   0xb   : > { %p555_p4 = por %p46_p2, %p45_p1  ;;  %s33_s17 = ssub.s32 %s492_s10, %s744_s14 }
   0xc   : > { %p77_p6 = scmp.eq.s32.totalorder %s293_s12, 1  ;;  %p36_p7 = scmp.eq.s32.totalorder %s33_s17, 0 }
   0xd   : > { %p561_p8 = por %p52_p5, %p51_p3  ;;  %p83_p10 = scmp.eq.s32.totalorder %s294_s13, 1 }
   0xe   : > { %p565_p9 = por %p77_p6, %p45_p1  ;;  %p330_p13 = scmp.lt.s32.totalorder %s496_s11, 2 }
   0xf   : > { %s570_s20 = scalar_select %p36_p7, %s484_s8, %s38_s15  }
  0x10   : > { %s731_s19 = scalar_select %p565_p9, 1, 0 }
  0x11   : > { %p572_p11 = por %p83_p10, %p51_p3  ;;  %s103_s22 = sand.u32 1, %s484_s8  }
  0x12   : > { %s297_s23 = sshll.u32 %s103_s22, 7  ;;  %s316_s24 = sshll.u32 %s492_s10, 11 }
  0x13   : > { %s732_s21 = scalar_select %p572_p11, 1, 0 }
  0x14   : > { %s583_s27 = scalar_lea.hbm %s726_s0, %s316_s24  ;;  %s107_s28 = scalar_lea.vmem [#allocation2], %s297_s23 }
  0x15   : > { %s117_s29 = sshll.u32 %s107_s28, 4  ;;  %p589_p0 = pnand %p330_p13, %p555_p4  ;;  %s585_s29 = int_to_ptr.vmem [resolvable:$true] %s117_s29 }
  0x16   : > { %s594_s2 = scalar_lea.sflag [#allocation3], %s103_s22  ;;  %s384_s3 = scalar_lea.hbm %s583_s27, 2048 }
  0x17   : > { %p385_p2 = scmp.ne.s32.totalorder %s583_s27, %s384_s3  ;;  %p386_p3 = pneg %p589_p0 }
  0x18   : > { %s389_s12 = scalar_lea.hbm %s726_s0, 4096  ;;  %p390_p4 = scmp.lt.u32.totalorder %s583_s27, %s726_s0 }
  0x19   : > { %p387_p5 = pnand %p386_p3, %p385_p2  ;;  %p391_p7 = scmp.lt.u32.totalorder %s389_s12, %s384_s3 }
  0x1a   : > { %p393_p13 = scmp.lt.u32.totalorder %s384_s3, %s583_s27 }
  0x1b   : > { %p388_p6 = pneg %p387_p5  ;;  %p392_p10 = por %p391_p7, %p390_p4 }
  0x1d   : > { %p394_p12 = por %p393_p13, %p392_p10 }
  0x1f   : > { %p395_p1 = pnand %p394_p12, %p388_p6 }
  0x21   : > { %398 = shalt.err (!%p395_p1)
}
  0x22   : > { %s399_s16 = scalar_lea.vmem %s585_s29, 2048  ;;  %s498_s17 = smov [#allocation2]  }
  0x23   : > { %p400_p2 = scmp.ne.s32.totalorder %s585_s29, %s399_s16  ;;  %s404_s22 = sshll.u32 %s498_s17, 4  ;;  %s405_s22 = int_to_ptr.vmem [resolvable:$false] %s404_s22 }
  0x24   : > { %s406_s23 = scalar_lea.vmem %s405_s22, 4096  ;;  %p407_p9 = scmp.lt.s32.totalorder %s585_s29, %s405_s22 }
  0x25   : > { %p402_p5 = pnand %p400_p2, %p386_p3  ;;  %p408_p4 = scmp.lt.s32.totalorder %s406_s23, %s399_s16 }
  0x27   : > { %p403_p11 = pneg %p402_p5  ;;  %p409_p7 = por %p408_p4, %p407_p9 }
  0x29   : > { %p410_p10 = pnand %p409_p7, %p403_p11 }
  0x2b   : > { %413 = shalt.err (!%p410_p10)
}
  0x2c   : > { %s499_s24 = smov 256   ;;  %s500_s25 = smov 16  }
  0x2d   : > { %325 = dma.hbm_to_vmem [thread:$0]  (!%p589_p0), %s583_s27, 2048, %s585_s29, %s594_s2, %s499_s24, %s499_s24, %s500_s25  }
  0x2e   : > { %p125_p12 = scmp.lt.s32.totalorder %s496_s11, 3  ;;  %p734_p1 = scmp.ge.s32.totalorder %s496_s11, 1 }
  0x30   : > { %p126_p3 = pnand %p734_p1, %p125_p12 }
  0x31   : > { %s626_s26 = sand.u32 (!%p126_p3), 1, %s480_s7  }
  0x32   : > { %129 = sbr.rel (%p126_p3) target bundleno = 85 (0x55), region = 24  ;;  %s301_s28 = sshll.u32 (!%p126_p3), %s626_s26, 7 }
  0x33   : > { %s132_s3 = scalar_lea.sflag (!%p126_p3), [#allocation3], %s626_s26  ;;  %s630_s4 = scalar_lea.vmem (!%p126_p3), [#allocation2], %s301_s28 }
  0x39   : > { %467 = dma.done.wait (%p561_p8), %s132_s3, 2048  }
  0x3a   : > { %469 = vsyncadd (%p561_p8), %s132_s3, 4294965248  ;;  %v156_v0 = vld [vmem:[%s630_s4] sm:$0xff]  ;;  %v157_v1 = vld [vmem:[%s630_s4 + $0x10] sm:$0xff]  ;;  %s317_s27 = sshll.u32 %s488_s9, 11  ;;  %s640_s29 = scalar_lea.vmem [#allocation5], %s301_s28 }
  0x3b   : > { %v158_v2 = vld [vmem:[%s630_s4 + $0x20] sm:$0xff]  ;;  %s206_s18 = sshll.u32 %s640_s29, 4  ;;  %164 = vst [vmem:[%s640_s29] sm:$0xff] %v156_v0  ;;  %165 = vst [vmem:[%s640_s29 + $0x10] sm:$0xff] %v157_v1  ;;  %v159_v3 = vld [vmem:[%s630_s4 + $0x30] sm:$0xff]  ;;  %s664_s2 = scalar_lea.hbm %s727_s1, %s317_s27  ;;  %s666_s18 = int_to_ptr.vmem [resolvable:$true] %s206_s18 }
  0x3c   : > { %166 = vst [vmem:[%s640_s29 + $0x20] sm:$0xff] %v158_v2  ;;  %v160_v4 = vld [vmem:[%s630_s4 + $0x40] sm:$0xff]  ;;  %v161_v5 = vld [vmem:[%s630_s4 + $0x50] sm:$0xff]  ;;  %167 = vst [vmem:[%s640_s29 + $0x30] sm:$0xff] %v159_v3  ;;  %s190_s5 = scalar_lea.sflag [#allocation4], %s626_s26  ;;  %s414_s12 = scalar_lea.vmem %s666_s18, 2048 }
  0x3d   : > { %168 = vst [vmem:[%s640_s29 + $0x40] sm:$0xff] %v160_v4  ;;  %169 = vst [vmem:[%s640_s29 + $0x50] sm:$0xff] %v161_v5  ;;  %v162_v6 = vld [vmem:[%s630_s4 + $0x60] sm:$0xff]  ;;  %v163_v7 = vld [vmem:[%s630_s4 + $0x70] sm:$0xff]  ;;  %p415_p8 = scmp.ne.s32.totalorder %s666_s18, %s414_s12  ;;  %p735_p9 = scmp.ne.s32.totalorder %s731_s19, 0 }
  0x3e   : > { %v172_v8 = vld [vmem:[%s630_s4 + $0x8] sm:$0xff]  ;;  %170 = vst [vmem:[%s640_s29 + $0x60] sm:$0xff] %v162_v6  ;;  %171 = vst [vmem:[%s640_s29 + $0x70] sm:$0xff] %v163_v7  ;;  %v173_v9 = vld [vmem:[%s630_s4 + $0x18] sm:$0xff]  ;;  %s501_s13 = smov [#allocation5]  }
  0x3f   : > { %303 = vst [vmem:[%s640_s29 + $0x8] sm:$0xff] %v172_v8  ;;  %v174_v10 = vld [vmem:[%s630_s4 + $0x28] sm:$0xff]  ;;  %v175_v11 = vld [vmem:[%s630_s4 + $0x38] sm:$0xff]  ;;  %304 = vst [vmem:[%s640_s29 + $0x18] sm:$0xff] %v173_v9  ;;  %p416_p11 = pnand %p415_p8, %p735_p9  ;;  %s418_s15 = sshll.u32 %s501_s13, 4  ;;  %s419_s15 = int_to_ptr.vmem [resolvable:$false] %s418_s15 }
  0x40   : > { %305 = vst [vmem:[%s640_s29 + $0x28] sm:$0xff] %v174_v10  ;;  %306 = vst [vmem:[%s640_s29 + $0x38] sm:$0xff] %v175_v11  ;;  %v176_v12 = vld [vmem:[%s630_s4 + $0x48] sm:$0xff]  ;;  %v177_v13 = vld [vmem:[%s630_s4 + $0x58] sm:$0xff]  ;;  %s420_s16 = scalar_lea.vmem %s419_s15, 4096  ;;  %p421_p6 = scmp.lt.s32.totalorder %s666_s18, %s419_s15 }
  0x41   : > { %v178_v14 = vld [vmem:[%s630_s4 + $0x68] sm:$0xff]  ;;  %307 = vst [vmem:[%s640_s29 + $0x48] sm:$0xff] %v176_v12  ;;  %308 = vst [vmem:[%s640_s29 + $0x58] sm:$0xff] %v177_v13  ;;  %v179_v15 = vld [vmem:[%s630_s4 + $0x78] sm:$0xff]  ;;  %p417_p0 = pneg %p416_p11  ;;  %p422_p13 = scmp.lt.s32.totalorder %s420_s16, %s414_s12 }
  0x42   : > { %309 = vst [vmem:[%s640_s29 + $0x68] sm:$0xff] %v178_v14  ;;  %310 = vst [vmem:[%s640_s29 + $0x78] sm:$0xff] %v179_v15 }
  0x43   : > { %p423_p2 = por %p422_p13, %p421_p6 }
  0x45   : > { %p424_p5 = pnand %p423_p2, %p417_p0 }
  0x47   : > { %427 = shalt.err (!%p424_p5)
}
  0x48   : > { %s428_s17 = scalar_lea.hbm %s664_s2, 2048  ;;  %s432_s24 = scalar_lea.hbm %s727_s1, 4096 }
  0x49   : > { %p429_p4 = scmp.ne.s32.totalorder %s664_s2, %s428_s17  ;;  %p433_p12 = scmp.lt.u32.totalorder %s664_s2, %s727_s1 }
  0x4a   : > { %p434_p1 = scmp.lt.u32.totalorder %s432_s24, %s428_s17  ;;  %p436_p8 = scmp.lt.u32.totalorder %s428_s17, %s664_s2 }
  0x4b   : > { %p430_p7 = pnand %p429_p4, %p735_p9 }
  0x4c   : > { %p435_p3 = por %p434_p1, %p433_p12 }
  0x4d   : > { %p431_p10 = pneg %p430_p7 }
  0x4e   : > { %p437_p11 = por %p436_p8, %p435_p3 }
  0x50   : > { %p438_p0 = pnand %p437_p11, %p431_p10 }
  0x52   : > { %441 = shalt.err (!%p438_p0)
}
  0x53   : > { %s502_s3 = smov 128   ;;  %s503_s4 = smov 8  }
  0x54   : > { %320 = dma.vmem_to_hbm [thread:$0]  (%p735_p9), %s666_s18, 2048, %s664_s2, %s190_s5, %s502_s3, %s502_s3, %s503_s4  }
  0x55 PF: > { %s221_s27 = sand.u32 1, %s476_s6   ;;  %p736_p6 = scmp.ne.s32.totalorder %s732_s21, 0 }
  0x56   : > { %p737_p13 = scmp.ge.s32.totalorder %s496_s11, 2  ;;  %s222_s29 = scalar_lea.sflag [#allocation4], %s221_s27 }
  0x58   : > { %p327_p2 = pnand %p737_p13, %p736_p6 }
  0x5a   : > { %471 = dma.done.wait (!%p327_p2), %s222_s29, 2048  }
  0x5b   : > { %473 = vsyncadd (!%p327_p2), %s222_s29, 4294965248  ;;  %s17_s11 = sadd.s32 1, %s496_s11   ;;  %s738_s6 = smov %s480_s7 }
  0x5c   : > { %p14_p5 = scmp.ge.s32.totalorder %s17_s11, 4   ;;  %s739_s7 = smov %s484_s8 }
  0x5d   : > { %s740_s8 = smov %s570_s20  ;;  %s741_s9 = smov %s492_s10 }
  0x5e   : > { %s742_s10 = smov %s744_s14  ;;  %16 = sbr.rel (!%p14_p5) target bundleno = 6 (0x6), region = 70 }
  0x65   :  { %227 = vsyncpa [#allocation3], 1 }
  0x66   :  { %229 = vsyncpa [#allocation3 + $0x1], 1 }
  0x67   :  { %230 = vsyncpa [#allocation4], 1 }
  0x68   :  { %232 = vsyncpa [#allocation4 + $0x1], 1 }

</bundles_post_ra>
